<compile_context>
chip_gen: v7x
topology: tpu7x:2x2x1
jax: 0.10.0
libtpu: 0.0.40
codegen_flags: <defaults>
</compile_context>

<pallas_src>
import jax
import jax.numpy as jnp
from jax import lax
from jax.experimental import pallas as pl
from jax.experimental.pallas import tpu as pltpu
import numpy as np


def _cdiv(a: int, b: int) -> int:
    return (a + b - 1) // b


def _round_up(v: int, m: int) -> int:
    return _cdiv(v, m) * m


# Contract on the last dim of both operands: (m, K) x (n, K) -> (m, n).
_DN = (((1,), (1,)), ((), ()))


def _dora_kernel(x_ref, w_ref, xa_ref, b_ref, s_ref, o_ref, acc_ref):
    """Grid = (row tiles i, out tiles j, K tiles k); k is the reduction axis."""
    k = pl.program_id(2)

    @pl.when(k == 0)
    def _():
        # LoRA contribution (scaling already folded into xa in the wrapper):
        # (tm, rank) x (tn, rank)^T -> (tm, tn), f32 accumulate.  Computed once
        # per (i, j) tile, not per K step.
        acc_ref[...] = lax.dot_general(
            xa_ref[...], b_ref[...], _DN, preferred_element_type=jnp.float32)

    # Base contribution for this K slice: (tm, tk) x (tn, tk)^T, native dtype
    # into the MXU, f32 accumulation.
    acc_ref[...] += lax.dot_general(
        x_ref[...], w_ref[...], _DN, preferred_element_type=jnp.float32)

    @pl.when(k == pl.num_programs(2) - 1)
    def _():
        # out = s * (base + scaling*lora)  ==  base + (s-1)*base + s*scaling*lora
        s = s_ref[...].astype(jnp.float32)            # (1, tn)
        o_ref[...] = (s * acc_ref[...]).astype(o_ref.dtype)


def dora_linear_forward(x, weight, lora_a, lora_b, magnitude, scaling, *,
                        tm=256, tn=256,
                        k_tile_budget_bytes=12 << 20,
                        vmem_limit_bytes=None):
    """DoRA forward (use_bias=False, dropout=0, quantize_base=False).

    x: (..., in_dim) -> (..., out_dim).
    Generation notes: tm=512 pays off on v6e for large M; keep tm<=384 on v7x
    (64 MiB VMEM); on v5e feed bf16 operands if possible.
    """
    assert tm % 8 == 0, "tm must be a multiple of 8 (sublane)"
    assert tn % 128 == 0, "tn must be a multiple of 128 (lane)"

    orig_shape = x.shape
    in_dim = orig_shape[-1]
    out_dim = weight.shape[0]
    rank = lora_a.shape[0]
    scaling = float(scaling)
    f32 = jnp.float32

    # ---- hoisted x-independent DoRA scale: magnitude / ||W + scaling*B@A|| ----
    # Expanded norm avoids materializing the (out_dim, in_dim) f32 temporary.
    a32 = lora_a.astype(f32)                                   # (rank, in_dim)
    b32 = lora_b.astype(f32)                                   # (out, rank)
    w32 = weight.astype(f32)                                   # (out, in_dim) view/convert
    w_rowsq = jnp.sum(w32 * w32, axis=1)                       # (out,)
    wa = jnp.dot(w32, a32.T)                                   # (out, rank)
    aat = jnp.dot(a32, a32.T)                                  # (rank, rank)
    cross = jnp.sum(wa * b32, axis=1)                          # (out,)
    quad = jnp.sum(jnp.dot(b32, aat) * b32, axis=1)            # (out,)
    norm_sq = w_rowsq + 2.0 * scaling * cross + (scaling ** 2) * quad
    weight_norm = jnp.sqrt(jnp.maximum(norm_sq, 0.0))
    mag_norm_scale = (magnitude.astype(f32) / weight_norm).reshape(1, out_dim)

    # ---- flatten x; hoist xa = scaling * (x @ A.T) (reused across all out tiles) ----
    x2 = x.reshape(-1, in_dim)
    M = x2.shape[0]
    xa = (jnp.dot(x2.astype(f32), a32.T) * scaling).astype(x2.dtype)   # (M, rank)

    # ---- right-sized row tile (padding tail < one sublane multiple) ----
    n_row_tiles = _cdiv(M, tm)
    tm_eff = _round_up(_cdiv(M, n_row_tiles), 8)
    M_pad = _round_up(M, tm_eff)

    # ---- right-sized, lane-dense out tile ----
    n_col_tiles = _cdiv(out_dim, tn)
    tn_eff = _round_up(_cdiv(out_dim, n_col_tiles), 128)
    out_pad = _round_up(out_dim, tn_eff)

    # ---- K tile: keep the double-buffered x/W streams within budget ----
    itemsize = max(jnp.dtype(x2.dtype).itemsize, jnp.dtype(weight.dtype).itemsize)
    full_k_bytes = 2 * (tm_eff + tn_eff) * in_dim * itemsize
    if in_dim <= 256 or full_k_bytes <= k_tile_budget_bytes:
        tk = in_dim                      # single K step; block = full in_dim
        K_pad = in_dim
    else:
        tk = max(128, (k_tile_budget_bytes // (2 * (tm_eff + tn_eff) * itemsize))
                 // 128 * 128)
        tk = min(tk, _round_up(in_dim, 128))
        K_pad = _round_up(in_dim, tk)

    # ---- pad operands (zero K/row/col padding contributes nothing) ----
    if M_pad != M:
        x2 = jnp.pad(x2, ((0, M_pad - M), (0, 0)))
        xa = jnp.pad(xa, ((0, M_pad - M), (0, 0)))
    w_p = weight
    if K_pad != in_dim:
        x2 = jnp.pad(x2, ((0, 0), (0, K_pad - in_dim)))
        w_p = jnp.pad(w_p, ((0, 0), (0, K_pad - in_dim)))
    b_p, s_p = lora_b, mag_norm_scale
    if out_pad != out_dim:
        pad = out_pad - out_dim
        w_p = jnp.pad(w_p, ((0, pad), (0, 0)))
        b_p = jnp.pad(lora_b, ((0, pad), (0, 0)))
        s_p = jnp.pad(mag_norm_scale, ((0, 0), (0, pad)))

    grid = (M_pad // tm_eff, out_pad // tn_eff, K_pad // tk)

    # ---- VMEM limit sized from the double-buffered tile footprint ----
    if vmem_limit_bytes is None:
        out_isz = jnp.dtype(x.dtype).itemsize
        est = (2 * tm_eff * tk * jnp.dtype(x2.dtype).itemsize        # x
               + 2 * tn_eff * tk * jnp.dtype(w_p.dtype).itemsize     # W
               + 2 * tm_eff * rank * jnp.dtype(xa.dtype).itemsize    # xa
               + 2 * tn_eff * rank * jnp.dtype(b_p.dtype).itemsize   # lora_b
               + 2 * tn_eff * 4                                      # scale row
               + 2 * tm_eff * tn_eff * out_isz                       # out
               + tm_eff * tn_eff * 4)                                # acc scratch
        vmem_limit_bytes = int(min(max(int(est * 1.5) + (2 << 20), 32 << 20),
                                   64 << 20))

    out = pl.pallas_call(
        _dora_kernel,
        out_shape=jax.ShapeDtypeStruct((M_pad, out_pad), x.dtype),
        grid_spec=pltpu.PrefetchScalarGridSpec(
            num_scalar_prefetch=0,
            grid=grid,
            in_specs=[
                pl.BlockSpec((tm_eff, tk),   lambda i, j, k: (i, k)),   # x row/K tile
                pl.BlockSpec((tn_eff, tk),   lambda i, j, k: (j, k)),   # base W tile
                pl.BlockSpec((tm_eff, rank), lambda i, j, k: (i, 0)),   # scaled x@A.T
                pl.BlockSpec((tn_eff, rank), lambda i, j, k: (j, 0)),   # lora_b tile
                pl.BlockSpec((1, tn_eff),    lambda i, j, k: (0, j)),   # mag/||.||
            ],
            out_specs=pl.BlockSpec((tm_eff, tn_eff), lambda i, j, k: (i, j)),
            scratch_shapes=[pltpu.VMEM((tm_eff, tn_eff), jnp.float32)],
        ),
        compiler_params=pltpu.CompilerParams(
            dimension_semantics=("parallel", "parallel", "arbitrary"),
            vmem_limit_bytes=vmem_limit_bytes,
        ),
    )(x2, w_p, xa, b_p, s_p)

    out = out[:M, :out_dim]
    return out.reshape(*orig_shape[:-1], out_dim)


def dora_linear_reference(x, weight, lora_a, lora_b, magnitude, scaling):
    """Pure-JAX reference mirroring the literal PyTorch forward."""
    base_out = x @ weight.T
    lora_out = (x @ lora_a.T) @ lora_b.T
    lora_weight = lora_b @ lora_a
    w_adapted = weight + scaling * lora_weight
    weight_norm = jnp.linalg.norm(w_adapted, axis=1)
    mag_norm_scale = (magnitude / weight_norm).reshape(1, -1)
    dora_out = (mag_norm_scale - 1.0) * base_out + mag_norm_scale * lora_out * scaling
    return dora_out + base_out


if __name__ == "__main__":
    def run_case(key, batch_shape, in_dim, out_dim, rank, alpha,
                 dtype=jnp.float32, rtol=1e-5, atol=1e-5, **fwd_kwargs):
        scaling = alpha / rank
        kx, kw, ka, kb = jax.random.split(key, 4)
        # base weight / lora_a: kaiming_uniform(a=sqrt(5)) -> U(-1/sqrt(in), 1/sqrt(in))
        bound = 1.0 / np.sqrt(in_dim)
        weight = jax.random.uniform(kw, (out_dim, in_dim), dtype, -bound, bound)
        lora_a = jax.random.uniform(ka, (rank, in_dim), dtype, -bound, bound)
        # lora_b: module initializes to zeros; use small random values so the full
        # DoRA path (lora_out, B@A, weight_norm) is exercised non-trivially.
        lora_b = 0.02 * jax.random.normal(kb, (out_dim, rank), dtype)
        # magnitude per initialize_dora_magnitude(): ||W + scaling*B@A|| along dim=1
        magnitude = jnp.linalg.norm(weight + scaling * (lora_b @ lora_a), axis=1)
        x = jax.random.normal(kx, (*batch_shape, in_dim), dtype)

        out = dora_linear_forward(x, weight, lora_a, lora_b, magnitude, scaling,
                                  **fwd_kwargs)
        out = jax.block_until_ready(out)
        ref = dora_linear_reference(
            x.reshape(-1, in_dim), weight, lora_a, lora_b, magnitude, scaling
        ).reshape(*batch_shape, out_dim)
        np.testing.assert_allclose(np.asarray(out), np.asarray(ref),
                                   rtol=rtol, atol=atol)

    key = jax.random.PRNGKey(0)
    k1, k2 = jax.random.split(key)

    # Case 1: module-default small shape (batch=2, seq=8, in_dim=32, out_dim=32, rank=4).
    run_case(k1, (2, 8), 32, 32, 4, 8.0)

    # Case 2: exercises out_dim/K padding, row-tile right-sizing and the K-reduction
    # grid axis (tiny K budget forces tk=128 -> 3 K steps with accumulator scratch).
    run_case(k2, (5, 8), 320, 200, 8, 16.0, rtol=1e-5, atol=5e-5,
             k_tile_budget_bytes=256 * 1024)

    # TODO(synk): quantize_base=True (NF4 base weight) path not implemented.
    print("KERNEL_OK")
</pallas_src>

<mosaic_0001>
module attributes {stable_mosaic.version = 11 : i64} {
  func.func @_dora_kernel(%arg0: i32, %arg1: i32, %arg2: i32, %arg3: memref<16x32xf32, #tpu.memory_space<vmem>>, %arg4: memref<128x32xf32, #tpu.memory_space<vmem>>, %arg5: memref<16x4xf32, #tpu.memory_space<vmem>>, %arg6: memref<128x4xf32, #tpu.memory_space<vmem>>, %arg7: memref<1x128xf32, #tpu.memory_space<vmem>>, %arg8: memref<16x128xf32, #tpu.memory_space<vmem>>, %arg9: memref<16x128xf32, #tpu.memory_space<vmem>>) attributes {dimension_semantics = [#tpu.dimension_semantics<parallel>, #tpu.dimension_semantics<parallel>, #tpu.dimension_semantics<arbitrary>], iteration_bounds = array<i64: 1, 1, 1>, scalar_prefetch = 0 : i64, scratch_operands = 1 : i64, tpu.core_type = #tpu.core_type<tc>, window_params = [{transform_indices = @transform_0, window_bounds = array<i64: 16, 32>}, {transform_indices = @transform_1, window_bounds = array<i64: 128, 32>}, {transform_indices = @transform_2, window_bounds = array<i64: 16, 4>}, {transform_indices = @transform_3, window_bounds = array<i64: 128, 4>}, {transform_indices = @transform_4, window_bounds = array<i64: 1, 128>}, {transform_indices = @transform_5, window_bounds = array<i64: 16, 128>}]} {
    %c0_i32 = arith.constant 0 : i32
    %0 = arith.cmpi eq, %arg2, %c0_i32 : i32
    %1 = arith.extui %0 : i1 to i32
    %c0_i32_0 = arith.constant 0 : i32
    %2 = arith.cmpi ne, %1, %c0_i32_0 : i32
    scf.if %2 {
      %c0_10 = arith.constant 0 : index
      %c0_11 = arith.constant 0 : index
      %12 = vector.load %arg5[%c0_10, %c0_11] : memref<16x4xf32, #tpu.memory_space<vmem>>, vector<16x4xf32>
      %c0_12 = arith.constant 0 : index
      %c0_13 = arith.constant 0 : index
      %13 = vector.load %arg6[%c0_12, %c0_13] : memref<128x4xf32, #tpu.memory_space<vmem>>, vector<128x4xf32>
      %cst_14 = arith.constant dense<0.000000e+00> : vector<16x128xf32>
      %14 = tpu.matmul %12, %13, %cst_14 {dimension_numbers = #tpu.dot_dimension_numbers<[1], [1], [0], [0], [0, 0, 1, 0], [], []>} : vector<16x4xf32>, vector<128x4xf32>, vector<16x128xf32> -> vector<16x128xf32>
      %c0_15 = arith.constant 0 : index
      %c0_16 = arith.constant 0 : index
      %15 = vector.load %arg9[%c0_15, %c0_16] : memref<16x128xf32, #tpu.memory_space<vmem>>, vector<16x128xf32>
      tpu.vector_store %arg9[%c0_15, %c0_16], %14 {strides = array<i32>} : memref<16x128xf32, #tpu.memory_space<vmem>>, vector<16x128xf32>,
    } else {
    }
    %c0 = arith.constant 0 : index
    %c0_1 = arith.constant 0 : index
    %3 = vector.load %arg9[%c0, %c0_1] : memref<16x128xf32, #tpu.memory_space<vmem>>, vector<16x128xf32>
    %c0_2 = arith.constant 0 : index
    %c0_3 = arith.constant 0 : index
    %4 = vector.load %arg3[%c0_2, %c0_3] : memref<16x32xf32, #tpu.memory_space<vmem>>, vector<16x32xf32>
    %c0_4 = arith.constant 0 : index
    %c0_5 = arith.constant 0 : index
    %5 = vector.load %arg4[%c0_4, %c0_5] : memref<128x32xf32, #tpu.memory_space<vmem>>, vector<128x32xf32>
    %cst = arith.constant dense<0.000000e+00> : vector<16x128xf32>
    %6 = tpu.matmul %4, %5, %cst {dimension_numbers = #tpu.dot_dimension_numbers<[1], [1], [0], [0], [0, 0, 1, 0], [], []>} : vector<16x32xf32>, vector<128x32xf32>, vector<16x128xf32> -> vector<16x128xf32>
    %7 = arith.addf %3, %6 : vector<16x128xf32>
    %c0_6 = arith.constant 0 : index
    %c0_7 = arith.constant 0 : index
    %8 = vector.load %arg9[%c0_6, %c0_7] : memref<16x128xf32, #tpu.memory_space<vmem>>, vector<16x128xf32>
    tpu.vector_store %arg9[%c0_6, %c0_7], %7 {strides = array<i32>} : memref<16x128xf32, #tpu.memory_space<vmem>>, vector<16x128xf32>,
    %c0_i32_8 = arith.constant 0 : i32
    %9 = arith.cmpi eq, %arg2, %c0_i32_8 : i32
    %10 = arith.extui %9 : i1 to i32
    %c0_i32_9 = arith.constant 0 : i32
    %11 = arith.cmpi ne, %10, %c0_i32_9 : i32
    scf.if %11 {
      %c0_10 = arith.constant 0 : index
      %c0_11 = arith.constant 0 : index
      %12 = vector.load %arg7[%c0_10, %c0_11] : memref<1x128xf32, #tpu.memory_space<vmem>>, vector<1x128xf32>
      %c0_12 = arith.constant 0 : index
      %c0_13 = arith.constant 0 : index
      %13 = vector.load %arg9[%c0_12, %c0_13] : memref<16x128xf32, #tpu.memory_space<vmem>>, vector<16x128xf32>
      %14 = vector.broadcast %12 : vector<1x128xf32> to vector<16x128xf32>
      %15 = arith.mulf %14, %13 : vector<16x128xf32>
      %c0_14 = arith.constant 0 : index
      %c0_15 = arith.constant 0 : index
      %16 = vector.load %arg8[%c0_14, %c0_15] : memref<16x128xf32, #tpu.memory_space<vmem>>, vector<16x128xf32>
      tpu.vector_store %arg8[%c0_14, %c0_15], %15 {strides = array<i32>} : memref<16x128xf32, #tpu.memory_space<vmem>>, vector<16x128xf32>,
    } else {
    }
    return
  }
  func.func @transform_0(%arg0: i32, %arg1: i32, %arg2: i32) -> (i32, i32) {
    %c0_i32 = arith.constant 0 : i32
    return %arg0, %arg2 : i32, i32
  }
  func.func @transform_1(%arg0: i32, %arg1: i32, %arg2: i32) -> (i32, i32) {
    %c0_i32 = arith.constant 0 : i32
    return %arg1, %arg2 : i32, i32
  }
  func.func @transform_2(%arg0: i32, %arg1: i32, %arg2: i32) -> (i32, i32) {
    %c0_i32 = arith.constant 0 : i32
    %c0_i32_0 = arith.constant 0 : i32
    return %arg0, %c0_i32 : i32, i32
  }
  func.func @transform_3(%arg0: i32, %arg1: i32, %arg2: i32) -> (i32, i32) {
    %c0_i32 = arith.constant 0 : i32
    %c0_i32_0 = arith.constant 0 : i32
    return %arg1, %c0_i32 : i32, i32
  }
  func.func @transform_4(%arg0: i32, %arg1: i32, %arg2: i32) -> (i32, i32) {
    %c0_i32 = arith.constant 0 : i32
    %c0_i32_0 = arith.constant 0 : i32
    return %c0_i32, %arg1 : i32, i32
  }
  func.func @transform_5(%arg0: i32, %arg1: i32, %arg2: i32) -> (i32, i32) {
    %c0_i32 = arith.constant 0 : i32
    return %arg0, %arg1 : i32, i32
  }
}

</mosaic_0001>

<bundles_post_ra>
// kernel: tpu_custom_call.1
= control target key start
LH: loop header
LB: loop body
LE: loop exit
PB: predicated region body
PF: predicated region fallthrough
CT: control target
= control target key end

     0   :  { %vm43_vm0 = vcmask 31744   ;;  %vm195_vm1 = vcmask 261120   ;;  %s865_s0 = inlined_call_operand.vmem [shape: f32[16,32], index: 0, kind: input, shape index: {}]   ;;  %s866_s1 = inlined_call_operand.vmem [shape: f32[128,32], index: 1, kind: input, shape index: {}]   ;;  %s867_s2 = inlined_call_operand.vmem [shape: f32[16,4], index: 2, kind: input, shape index: {}]   ;;  %s868_s3 = inlined_call_operand.vmem [shape: f32[128,4], index: 3, kind: input, shape index: {}]   ;;  %s869_s4 = inlined_call_operand.vmem [shape: f32[1,128], index: 4, kind: input, shape index: {}]   ;;  %s870_s5 = inlined_call_operand.hbm [shape: f32[16,128], index: 5, kind: output, shape index: {}]  }
   0x1   :  { %v27_v0 = vld [vmem:[%s868_s3] sm:$0xff]  ;;  %v28_v1 = vld [vmem:[%s868_s3 + $0x8] sm:$0xff]  ;;  %vm673_vm2 = vmpackc.low %vm43_vm0, %vm43_vm0 }
   0x2   :  { %v179_v2 = vld [vmem:[%s866_s1] sm:$0xff]  ;;  %v504_v3 = vpack.c.bf16 %v28_v1, %v27_v0  ;;  %v180_v5 = vld [vmem:[%s866_s1 + $0x8] sm:$0xff]  ;;  %v29_v6 = vld [vmem:[%s868_s3 + $0x10] sm:$0xff] }
   0x3   :  { %v552_v7 = vpack.c.bf16 %v180_v5, %v179_v2  ;;  %vm685_vm3 = vmpackc.low %vm195_vm1, %vm195_vm1  ;;  %v30_v9 = vld [vmem:[%s868_s3 + $0x18] sm:$0xff]  ;;  %v181_v10 = vld [vmem:[%s866_s1 + $0x10] sm:$0xff] }
   0x4   :  { %506 = vmatprep.subr.msk.bf16.mxu1 %vm673_vm2, %v504_v3  ;;  %v510_v11 = vpack.c.bf16 %v30_v9, %v29_v6  ;;  %v182_v12 = vld [vmem:[%s866_s1 + $0x18] sm:$0xff]  ;;  %v31_v14 = vld [vmem:[%s868_s3 + $0x20] sm:$0xff]  ;;  %v32_v15 = vld [vmem:[%s868_s3 + $0x28] sm:$0xff] }
   0x5   :  { %554 = vmatprep.subr.msk.bf16.mxu0 %vm685_vm3, %v552_v7  ;;  %509 = vmatpush3.bf16.xpose.msk.msra.mxu1 %vm673_vm2, %v504_v3  ;;  %v558_v13 = vpack.c.bf16 %v182_v12, %v181_v10  ;;  %v183_v16 = vld [vmem:[%s866_s1 + $0x20] sm:$0xff]  ;;  %v184_v17 = vld [vmem:[%s866_s1 + $0x28] sm:$0xff]  ;;  %v516_v18 = vpack.c.bf16 %v32_v15, %v31_v14 }
   0x6   :  { %557 = vmatpush3.bf16.xpose.msk.msra.mxu0 %vm685_vm3, %v552_v7  ;;  %512 = vmatprep.subr.msk.bf16.mxu1 %vm673_vm2, %v510_v11  ;;  %v564_v19 = vpack.c.bf16 %v184_v17, %v183_v16  ;;  %v25_v20 = vld [vmem:[%s867_s2] sm:$0xff] }
   0x7   :  { %560 = vmatprep.subr.msk.bf16.mxu0 %vm685_vm3, %v558_v13  ;;  %v177_v21 = vld [vmem:[%s865_s0] sm:$0xff]  ;;  %466 = vmatprep.mubr.msk.f32.mxu1 %vm43_vm0, %v25_v20 }
   0xd   :  { %515 = vmatpush3.bf16.xpose.msk.msra.mxu1 %vm673_vm2, %v510_v11 }
   0xe   :  { %10 = vsyncpa [#allocation4], 0  ;;  %563 = vmatpush3.bf16.xpose.msk.msra.mxu0 %vm685_vm3, %v558_v13  ;;  %518 = vmatprep.subr.msk.bf16.mxu1 %vm673_vm2, %v516_v18  ;;  %v33_v22 = vld [vmem:[%s868_s3 + $0x30] sm:$0xff]  ;;  %v34_v23 = vld [vmem:[%s868_s3 + $0x38] sm:$0xff]  ;;  %s629_s15 = smov [#allocation3]  }
   0xf   :  { %566 = vmatprep.subr.msk.bf16.mxu0 %vm685_vm3, %v564_v19  ;;  %501 = vmatprep.mubr.msk.f32.mxu0 %vm195_vm1, %v177_v21  ;;  %v185_v24 = vld [vmem:[%s866_s1 + $0x30] sm:$0xff]  ;;  %v186_v25 = vld [vmem:[%s866_s1 + $0x38] sm:$0xff]  ;;  %v522_v26 = vpack.c.bf16 %v34_v23, %v33_v22  ;;  %v35_v28 = vld [vmem:[%s868_s3 + $0x40] sm:$0xff]  ;;  %s350_s16 = sshll.u32 %s629_s15, 4  ;;  %s351_s16 = int_to_ptr.vmem [resolvable:$true] %s350_s16 }
  0x10   :  { %v570_v27 = vpack.c.bf16 %v186_v25, %v185_v24  ;;  %v36_v29 = vld [vmem:[%s868_s3 + $0x48] sm:$0xff]  ;;  %v187_v30 = vld [vmem:[%s866_s1 + $0x40] sm:$0xff]  ;;  %v37_v34 = vld [vmem:[%s868_s3 + $0x50] sm:$0xff]  ;;  %p610_p1 = scmp.lt.s32.totalorder %s351_s16, %s351_s16 }
  0x11   :  { %v188_v31 = vld [vmem:[%s866_s1 + $0x48] sm:$0xff]  ;;  %v528_v32 = vpack.c.bf16 %v36_v29, %v35_v28  ;;  %v38_v35 = vld [vmem:[%s868_s3 + $0x58] sm:$0xff]  ;;  %v189_v36 = vld [vmem:[%s866_s1 + $0x50] sm:$0xff] }
  0x12   :  { %v576_v33 = vpack.c.bf16 %v188_v31, %v187_v30  ;;  %v190_v37 = vld [vmem:[%s866_s1 + $0x58] sm:$0xff]  ;;  %v534_v38 = vpack.c.bf16 %v38_v35, %v37_v34  ;;  %v39_v40 = vld [vmem:[%s868_s3 + $0x60] sm:$0xff]  ;;  %v40_v41 = vld [vmem:[%s868_s3 + $0x68] sm:$0xff] }
  0x13   :  { %v582_v39 = vpack.c.bf16 %v190_v37, %v189_v36  ;;  %v191_v42 = vld [vmem:[%s866_s1 + $0x60] sm:$0xff]  ;;  %v192_v43 = vld [vmem:[%s866_s1 + $0x68] sm:$0xff]  ;;  %v540_v44 = vpack.c.bf16 %v40_v41, %v39_v40  ;;  %v41_v46 = vld [vmem:[%s868_s3 + $0x70] sm:$0xff] }
  0x14   :  { %v588_v45 = vpack.c.bf16 %v192_v43, %v191_v42  ;;  %v42_v47 = vld [vmem:[%s868_s3 + $0x78] sm:$0xff]  ;;  %v193_v48 = vld [vmem:[%s866_s1 + $0x70] sm:$0xff]  ;;  %v26_v52 = vld [vmem:[%s867_s2 + $0x8] sm:$0xff] }
  0x15   :  { %521 = vmatpush3.bf16.xpose.msk.msra.mxu1 %vm673_vm2, %v516_v18  ;;  %v194_v49 = vld [vmem:[%s866_s1 + $0x78] sm:$0xff]  ;;  %v546_v50 = vpack.c.bf16 %v42_v47, %v41_v46  ;;  %v178_v53 = vld [vmem:[%s865_s0 + $0x8] sm:$0xff]  ;;  %v397_v56 = vld [vmem:[%s869_s4] ss:$0 sm:$0xff]  ;;  %s605_s0 = scalar_lea.vmem %s351_s16, 256 }
  0x16   :  { %569 = vmatpush3.bf16.xpose.msk.msra.mxu0 %vm685_vm3, %v564_v19  ;;  %524 = vmatprep.subr.msk.bf16.mxu1 %vm673_vm2, %v522_v26  ;;  %v594_v51 = vpack.c.bf16 %v194_v49, %v193_v48  ;;  %p606_p0 = scmp.ne.s32.totalorder %s351_s16, %s605_s0  ;;  %p611_p2 = scmp.lt.s32.totalorder %s605_s0, %s605_s0 }
  0x17   :  { %572 = vmatprep.subr.msk.bf16.mxu0 %vm685_vm3, %v570_v27 }
  0x18   :  { %p612_p3 = por %p611_p2, %p610_p1 }
  0x1a   :  { %p613_p4 = pnand %p612_p3, %p606_p0 }
  0x1d   :  { %527 = vmatpush3.bf16.xpose.msk.msra.mxu1 %vm673_vm2, %v522_v26 }
  0x1e   :  { %575 = vmatpush3.bf16.xpose.msk.msra.mxu0 %vm685_vm3, %v570_v27  ;;  %530 = vmatprep.subr.msk.bf16.mxu1 %vm673_vm2, %v528_v32 }
  0x1f   :  { %578 = vmatprep.subr.msk.bf16.mxu0 %vm685_vm3, %v576_v33 }
  0x25   :  { %533 = vmatpush3.bf16.xpose.msk.msra.mxu1 %vm673_vm2, %v528_v32 }
  0x26   :  { %581 = vmatpush3.bf16.xpose.msk.msra.mxu0 %vm685_vm3, %v576_v33  ;;  %536 = vmatprep.subr.msk.bf16.mxu1 %vm673_vm2, %v534_v38 }
  0x27   :  { %584 = vmatprep.subr.msk.bf16.mxu0 %vm685_vm3, %v582_v39 }
  0x2d   :  { %539 = vmatpush3.bf16.xpose.msk.msra.mxu1 %vm673_vm2, %v534_v38 }
  0x2e   :  { %587 = vmatpush3.bf16.xpose.msk.msra.mxu0 %vm685_vm3, %v582_v39  ;;  %542 = vmatprep.subr.msk.bf16.mxu1 %vm673_vm2, %v540_v44 }
  0x2f   :  { %590 = vmatprep.subr.msk.bf16.mxu0 %vm685_vm3, %v588_v45 }
  0x35   :  { %545 = vmatpush3.bf16.xpose.msk.msra.mxu1 %vm673_vm2, %v540_v44 }
  0x36   :  { %593 = vmatpush3.bf16.xpose.msk.msra.mxu0 %vm685_vm3, %v588_v45  ;;  %548 = vmatprep.subr.msk.bf16.mxu1 %vm673_vm2, %v546_v50 }
  0x37   :  { %596 = vmatprep.subr.msk.bf16.mxu0 %vm685_vm3, %v594_v51 }
  0x3d   :  { %551 = vmatpush3.bf16.xpose.msk.msra.mxu1 %vm673_vm2, %v546_v50 }
  0x3e   :  { %599 = vmatpush3.bf16.xpose.msk.msra.mxu0 %vm685_vm3, %v594_v51 }
  0x44   :  { %467 = vmatmul.mubr.msk.f32.vlgmr.msra.gmra.mrb[0].mxu1 %vm43_vm0, %v26_v52 }
  0x45   :  { %502 = vmatmul.mubr.msk.f32.vlgmr.msra.gmra.mrb[0].mxu0 %vm195_vm1, %v178_v53 }
 0x117   :  { %v468_v54 = vpop.f32.mrb[0].mxu1 }
 0x118   :  { %v503_v55 = vpop.f32.mrb[0].mxu0  ;;  %v164_v57 = vpop.f32.mrb[1].mxu1 }
 0x119   :  { %v326_v58 = vadd.f32 %v503_v55, %v468_v54  ;;  %v316_v59 = vpop.f32.mrb[1].mxu0 }
 0x11a   :  { %v325_v60 = vadd.f32 %v316_v59, %v164_v57 }
 0x11b   :  { %v342_v61 = vmul.f32 %v397_v56, %v326_v58 }
 0x11c   :  { %v341_v62 = vmul.f32 %v397_v56, %v325_v60 }
 0x11d   :  { %344 = vst [vmem:[#allocation3 + $0x8] sm:$0xff] %v342_v61 }
 0x11e   :  { %343 = vst [vmem:[#allocation3] sm:$0xff] %v341_v62 }
 0x11f   :  { %616 = shalt.err (!%p613_p4)
}
 0x120   :  { %s617_s17 = scalar_lea.hbm %s870_s5, 256 }
 0x121   :  { %p618_p5 = scmp.ne.s32.totalorder %s870_s5, %s617_s17  ;;  %p621_p6 = scmp.lt.u32.totalorder %s617_s17, %s870_s5 }
 0x123   :  { %p623_p7 = pnand %p621_p6, %p618_p5 }
 0x125   :  { %626 = shalt.err (!%p623_p7)
}
 0x126   :  { %s630_s22 = smov 128   ;;  %s631_s23 = smov 8  }
 0x127   :  { %356 = dma.vmem_to_hbm [thread:$0]  %s351_s16, 256, %s870_s5, [#allocation4], %s630_s22, %s630_s22, %s631_s23  }
 0x128   :  { %627 = dma.done.wait [#allocation4], 256  }
 0x129   :  { %628 = vsyncadd [#allocation4], 4294967040 }
 0x12a   :  { %360 = vsyncpa [#allocation4], 1 }

</bundles_post_ra>
